<compile_context>
chip_gen: v7x
topology: tpu7x:2x2x1
jax: 0.10.0
libtpu: 0.0.40
codegen_flags: <defaults>
</compile_context>

<pallas_src>
import functools

import jax
import jax.numpy as jnp
from jax.experimental import pallas as pl
from jax.experimental.pallas import tpu as pltpu


def _sigmoid(e):
    # sigmoid(e) == 0.5 * tanh(0.5 * e) + 0.5 : a single EUP op per element,
    # agrees with jax.nn.sigmoid to ~1 ulp (well inside the 1e-5 tolerance).
    return 0.5 * jnp.tanh(0.5 * e) + 0.5


# --------------- single-pass kernel: whole (S, tf) column block in VMEM ------

def _attention_pooling_kernel(outs_ref, proto_ref, *, n):
    x = outs_ref[...].astype(jnp.float32)                  # (S, TF)
    mean = jnp.mean(x, axis=0, keepdims=True)              # (1, TF)
    d = (x - mean) ** 2                                     # (S, TF)
    v = jnp.sum(d, axis=0, keepdims=True) * (1.0 / n)       # (1, TF)
    inv = 1.0 / (4.0 * (v + 0.001))                         # one-row reciprocal
    e = d * inv + 0.5                                        # broadcast multiply
    w = _sigmoid(e)
    proto_ref[...] = jnp.sum(x * w, axis=0, keepdims=True).astype(proto_ref.dtype)


# --------------- S-tiled two-pass path (tall inputs) -------------------------

def _stats_kernel(outs_ref, mean_ref, inv_ref, sum_acc, sq_acc, *, total_s, n):
    s = pl.program_id(1)

    @pl.when(s == 0)
    def _():
        sum_acc[...] = jnp.zeros_like(sum_acc)
        sq_acc[...] = jnp.zeros_like(sq_acc)

    x = outs_ref[...].astype(jnp.float32)                   # (TS, TF)
    sum_acc[...] += jnp.sum(x, axis=0, keepdims=True)
    sq_acc[...] += jnp.sum(x * x, axis=0, keepdims=True)

    @pl.when(s == pl.num_programs(1) - 1)
    def _():
        mean = sum_acc[...] * (1.0 / total_s)
        # sum_i (x_i - mean)^2 == sumsq - S * mean^2
        v = (sq_acc[...] - total_s * mean * mean) * (1.0 / n)
        mean_ref[...] = mean
        inv_ref[...] = 1.0 / (4.0 * (v + 0.001))


def _pool_kernel(outs_ref, mean_ref, inv_ref, proto_ref, acc):
    s = pl.program_id(1)

    @pl.when(s == 0)
    def _():
        acc[...] = jnp.zeros_like(acc)

    x = outs_ref[...].astype(jnp.float32)
    d = (x - mean_ref[...]) ** 2
    w = _sigmoid(d * inv_ref[...] + 0.5)
    acc[...] += jnp.sum(x * w, axis=0, keepdims=True)

    @pl.when(s == pl.num_programs(1) - 1)
    def _():
        proto_ref[...] = acc[...].astype(proto_ref.dtype)


# --------------- generation-aware tile planning -------------------------------

def _vmem_capacity_bytes():
    """Physical VMEM of the attached TPU (v5e/v6e: 128 MiB, v7x: 64 MiB/TC)."""
    try:
        cap = int(getattr(pltpu.get_tpu_info(), "vmem_capacity_bytes", 0))
        if cap > 0:
            return cap
    except Exception:
        pass
    return 64 << 20   # conservative default (v7x-sized)


def _footprint(tf, ts, in_bytes):
    # Double-buffered input tile + f32 elementwise temporaries + small rows.
    return 2 * ts * tf * in_bytes + 3 * ts * tf * 4 + 8 * tf * 4


def _plan_tiles(S, F, in_bytes, budget):
    """Pick (feat_tile, s_tile); s_tile == S selects the single-pass path."""
    min_tf = 512 if in_bytes >= 4 else 1024      # lane-dense rows (>= 2 KiB DMA)
    max_tf = 4096

    def fits(tf, ts):
        return _footprint(tf, ts, in_bytes) <= budget

    if F % 128 == 0 and F > min_tf:
        cands = [t for t in range(128, min(F, max_tf) + 1, 128) if F % t == 0]
        dense = [t for t in cands if t >= min_tf] or [max(cands)]
    else:
        dense = [F]    # full-extent block is always legal

    # --- single-pass: whole (S, tf) column block resident in VMEM ---
    fitting = [t for t in dense if fits(t, S)]
    if fitting:
        # Prefer >= 4 grid steps (pipelines both v7x TensorCores), then >= 2.
        for min_steps in (4, 2, 1):
            pref = [t for t in fitting if F // t >= min_steps]
            if pref:
                return max(pref), S

    # --- S-tiled two-pass: keep the feature tile lane-dense, shrink S ---
    s_divs = [d for d in range(8, S + 1, 8) if S % d == 0]
    if not s_divs:
        # TODO(synk): masked/ragged S tiles; fall back to single pass here.
        return max(dense), S
    for tf in sorted(dense, reverse=True):
        for ts in sorted(s_divs, reverse=True):
            if fits(tf, ts):
                return tf, ts
    return min(dense), min(s_divs)


# --------------- public wrapper ------------------------------------------------

def attention_pooling(outs, size=None, *, feat_tile=None, s_tile=None):
    """outs: (S, F) array. Returns the (F,) pooled prototype.

    NOTE: matches PyTorch exactly -- the mean uses the actual row count S while
    the variance divisor uses `size - 1`; pass size == outs.shape[0] for the
    standard unbiased variance.
    """
    S, F = outs.shape
    if size is None:
        size = S
    assert size >= 2, "AttentionPooling requires size >= 2 (n = size - 1 > 0)"
    n = size - 1
    in_bytes = jnp.dtype(outs.dtype).itemsize

    capacity = _vmem_capacity_bytes()
    budget = max(capacity // 2 - (8 << 20), 16 << 20)    # ~56 MiB v5e/v6e, ~24 MiB v7x
    limit_cap = max(capacity - (16 << 20), 32 << 20)     # ~112 MiB / ~48 MiB

    auto_tf, auto_ts = _plan_tiles(S, F, in_bytes, budget)
    tf = min(feat_tile if feat_tile is not None else auto_tf, F)
    ts = min(s_tile if s_tile is not None else auto_ts, S)
    assert F % tf == 0, "feature dim must be divisible by the feature tile"
    assert S % ts == 0, "pooled dim must be divisible by the S tile"

    est = _footprint(tf, ts, in_bytes)
    vmem_limit = int(min(max(est + (8 << 20), 32 << 20), limit_cap))
    if est + (2 << 20) > vmem_limit:
        # Never clamp below the actual footprint (user-supplied tiles).
        vmem_limit = int(min(est + (2 << 20), capacity))

    cparams = pltpu.CompilerParams(
        dimension_semantics=("parallel",) if ts >= S else ("parallel", "arbitrary"),
        vmem_limit_bytes=vmem_limit,
    )

    if ts >= S:
        # Single-pass path: each grid step owns a full (S, tf) column block.
        proto = pl.pallas_call(
            functools.partial(_attention_pooling_kernel, n=n),
            out_shape=jax.ShapeDtypeStruct((1, F), outs.dtype),
            grid_spec=pltpu.PrefetchScalarGridSpec(
                num_scalar_prefetch=0,
                grid=(F // tf,),
                in_specs=[pl.BlockSpec((S, tf), lambda j: (0, j))],
                out_specs=pl.BlockSpec((1, tf), lambda j: (0, j)),
            ),
            compiler_params=cparams,
        )(outs)
        return proto[0]

    # S-tiled two-pass path: stats pass (mean + 1/(4(v+eps))) then pool pass.
    grid = (F // tf, S // ts)
    mean, inv = pl.pallas_call(
        functools.partial(_stats_kernel, total_s=S, n=n),
        out_shape=(jax.ShapeDtypeStruct((1, F), jnp.float32),
                   jax.ShapeDtypeStruct((1, F), jnp.float32)),
        grid_spec=pltpu.PrefetchScalarGridSpec(
            num_scalar_prefetch=0,
            grid=grid,
            in_specs=[pl.BlockSpec((ts, tf), lambda j, s: (s, j))],
            out_specs=[pl.BlockSpec((1, tf), lambda j, s: (0, j)),
                       pl.BlockSpec((1, tf), lambda j, s: (0, j))],
            scratch_shapes=[pltpu.VMEM((1, tf), jnp.float32),
                            pltpu.VMEM((1, tf), jnp.float32)],
        ),
        compiler_params=cparams,
    )(outs)

    proto = pl.pallas_call(
        _pool_kernel,
        out_shape=jax.ShapeDtypeStruct((1, F), outs.dtype),
        grid_spec=pltpu.PrefetchScalarGridSpec(
            num_scalar_prefetch=0,
            grid=grid,
            in_specs=[pl.BlockSpec((ts, tf), lambda j, s: (s, j)),
                      pl.BlockSpec((1, tf), lambda j, s: (0, j)),
                      pl.BlockSpec((1, tf), lambda j, s: (0, j))],
            out_specs=pl.BlockSpec((1, tf), lambda j, s: (0, j)),
            scratch_shapes=[pltpu.VMEM((1, tf), jnp.float32)],
        ),
        compiler_params=cparams,
    )(outs, mean, inv)
    return proto[0]


def attention_pooling_ref(outs, size):
    # Pure-JAX reference mirroring the PyTorch forward exactly.
    n = size - 1
    d = (outs - jnp.mean(outs, axis=0)) ** 2
    v = jnp.sum(d, axis=0) / n
    e = d / (4.0 * (v + 0.001)) + 0.5
    return jnp.sum(outs * jax.nn.sigmoid(e), axis=0)


if __name__ == "__main__":
    # Main (single-pass) path: size=8 "views" pooled over 256 features.
    key = jax.random.PRNGKey(0)
    S, F = 8, 256
    outs = jax.random.normal(key, (S, F), dtype=jnp.float32)

    proto = jax.block_until_ready(attention_pooling(outs, size=S))
    ref = attention_pooling_ref(outs, size=S)
    assert proto.shape == (F,)
    assert jnp.allclose(proto, ref, atol=1e-5, rtol=1e-5), "single-pass mismatch"

    # Exercise the S-tiled two-pass path on small shapes as well.
    S2, F2 = 16, 256
    outs2 = jax.random.normal(jax.random.PRNGKey(1), (S2, F2), dtype=jnp.float32)
    proto2 = jax.block_until_ready(attention_pooling(outs2, size=S2, s_tile=8))
    ref2 = attention_pooling_ref(outs2, size=S2)
    assert proto2.shape == (F2,)
    assert jnp.allclose(proto2, ref2, atol=1e-5, rtol=1e-5), "two-pass mismatch"

    print("KERNEL_OK")
</pallas_src>

<mosaic_0001>
module attributes {stable_mosaic.version = 11 : i64} {
  func.func @_attention_pooling_kernel(%arg0: i32, %arg1: memref<8x256xf32, #tpu.memory_space<vmem>>, %arg2: memref<1x256xf32, #tpu.memory_space<vmem>>) attributes {dimension_semantics = [#tpu.dimension_semantics<parallel>], iteration_bounds = array<i64: 1>, scalar_prefetch = 0 : i64, scratch_operands = 0 : i64, tpu.core_type = #tpu.core_type<tc>, window_params = [{transform_indices = @transform_0, window_bounds = array<i64: 8, 256>}, {transform_indices = @transform_1, window_bounds = array<i64: 1, 256>}]} {
    %c0 = arith.constant 0 : index
    %c0_0 = arith.constant 0 : index
    %0 = vector.load %arg1[%c0, %c0_0] : memref<8x256xf32, #tpu.memory_space<vmem>>, vector<8x256xf32>
    %cst = arith.constant dense<0.000000e+00> : vector<256xf32>
    %1 = vector.multi_reduction <add>, %0, %cst [0] : vector<8x256xf32> to vector<256xf32>
    %2 = vector.shape_cast %1 : vector<256xf32> to vector<1x256xf32>
    %cst_1 = arith.constant 8.000000e+00 : f32
    %3 = vector.broadcast %cst_1 : f32 to vector<1x256xf32>
    %4 = arith.divf %2, %3 : vector<1x256xf32>
    %5 = vector.broadcast %4 : vector<1x256xf32> to vector<8x256xf32>
    %6 = arith.subf %0, %5 : vector<8x256xf32>
    %7 = arith.mulf %6, %6 : vector<8x256xf32>
    %cst_2 = arith.constant dense<0.000000e+00> : vector<256xf32>
    %8 = vector.multi_reduction <add>, %7, %cst_2 [0] : vector<8x256xf32> to vector<256xf32>
    %9 = vector.shape_cast %8 : vector<256xf32> to vector<1x256xf32>
    %cst_3 = arith.constant 0.142857149 : f32
    %10 = vector.broadcast %cst_3 : f32 to vector<1x256xf32>
    %11 = arith.mulf %9, %10 : vector<1x256xf32>
    %cst_4 = arith.constant 1.000000e-03 : f32
    %12 = vector.broadcast %cst_4 : f32 to vector<1x256xf32>
    %13 = arith.addf %11, %12 : vector<1x256xf32>
    %cst_5 = arith.constant 4.000000e+00 : f32
    %14 = vector.broadcast %cst_5 : f32 to vector<1x256xf32>
    %15 = arith.mulf %14, %13 : vector<1x256xf32>
    %cst_6 = arith.constant 1.000000e+00 : f32
    %16 = vector.broadcast %cst_6 : f32 to vector<1x256xf32>
    %17 = arith.divf %16, %15 : vector<1x256xf32>
    %18 = vector.broadcast %17 : vector<1x256xf32> to vector<8x256xf32>
    %19 = arith.mulf %7, %18 : vector<8x256xf32>
    %cst_7 = arith.constant 5.000000e-01 : f32
    %20 = vector.broadcast %cst_7 : f32 to vector<8x256xf32>
    %21 = arith.addf %19, %20 : vector<8x256xf32>
    %cst_8 = arith.constant 5.000000e-01 : f32
    %22 = vector.broadcast %cst_8 : f32 to vector<8x256xf32>
    %23 = arith.mulf %22, %21 : vector<8x256xf32>
    %24 = math.tanh %23 : vector<8x256xf32>
    %cst_9 = arith.constant 5.000000e-01 : f32
    %25 = vector.broadcast %cst_9 : f32 to vector<8x256xf32>
    %26 = arith.mulf %25, %24 : vector<8x256xf32>
    %cst_10 = arith.constant 5.000000e-01 : f32
    %27 = vector.broadcast %cst_10 : f32 to vector<8x256xf32>
    %28 = arith.addf %26, %27 : vector<8x256xf32>
    %29 = arith.mulf %0, %28 : vector<8x256xf32>
    %cst_11 = arith.constant dense<0.000000e+00> : vector<256xf32>
    %30 = vector.multi_reduction <add>, %29, %cst_11 [0] : vector<8x256xf32> to vector<256xf32>
    %31 = vector.shape_cast %30 : vector<256xf32> to vector<1x256xf32>
    %c0_12 = arith.constant 0 : index
    %c0_13 = arith.constant 0 : index
    %32 = vector.load %arg2[%c0_12, %c0_13] : memref<1x256xf32, #tpu.memory_space<vmem>>, vector<1x256xf32>
    tpu.vector_store %arg2[%c0_12, %c0_13], %31 {strides = array<i32>} : memref<1x256xf32, #tpu.memory_space<vmem>>, vector<1x256xf32>,
    return
  }
  func.func @transform_0(%arg0: i32) -> (i32, i32) {
    %c0_i32 = arith.constant 0 : i32
    %c0_i32_0 = arith.constant 0 : i32
    return %c0_i32, %arg0 : i32, i32
  }
  func.func @transform_1(%arg0: i32) -> (i32, i32) {
    %c0_i32 = arith.constant 0 : i32
    %c0_i32_0 = arith.constant 0 : i32
    return %c0_i32, %arg0 : i32, i32
  }
}

</mosaic_0001>

<bundles_post_ra>
// kernel: tpu_custom_call.1
= control target key start
LH: loop header
LB: loop body
LE: loop exit
PB: predicated region body
PF: predicated region fallthrough
CT: control target
= control target key end

     0   :  { %6 = vsyncpa [#allocation3], 0  ;;  %s224_s0 = inlined_call_operand.hbm [shape: f32[8,256], index: 0, kind: input, shape index: {}]   ;;  %s225_s1 = inlined_call_operand.hbm [shape: f32[1,256], index: 1, kind: output, shape index: {}]  }
   0x1   :  { %7 = vsyncpa [#allocation4], 0  ;;  %s187_s6 = smov [#allocation2]   ;;  %s139_s10 = scalar_lea.hbm %s224_s0, 256 }
   0x2   :  { %s14_s7 = sshll.u32 %s187_s6, 4  ;;  %p140_p0 = scmp.ne.s32.totalorder %s224_s0, %s139_s10  ;;  %s15_s7 = int_to_ptr.vmem [resolvable:$true] %s14_s7 }
   0x3   :  { %p143_p1 = scmp.lt.u32.totalorder %s139_s10, %s224_s0 }
   0x5   :  { %p145_p2 = pnand %p143_p1, %p140_p0 }
   0x7   :  { %148 = shalt.err (!%p145_p2)
}
   0x8   :  { %s149_s15 = scalar_lea.vmem %s15_s7, 256  ;;  %p154_p4 = scmp.lt.s32.totalorder %s15_s7, %s15_s7 }
   0x9   :  { %p150_p3 = scmp.ne.s32.totalorder %s15_s7, %s149_s15  ;;  %p155_p5 = scmp.lt.s32.totalorder %s149_s15, %s149_s15 }
   0xb   :  { %p156_p6 = por %p155_p5, %p154_p4 }
   0xd   :  { %p157_p7 = pnand %p156_p6, %p150_p3 }
   0xf   :  { %160 = shalt.err (!%p157_p7)
}
  0x10   :  { %17 = dma.hbm_to_vmem [thread:$0]  %s224_s0, 256, %s15_s7, [#allocation3]  }
  0x11   :  { %183 = dma.done.wait [#allocation3], 256  }
  0x12   :  { %184 = vsyncadd [#allocation3], 4294967040  ;;  %v21_v0 = vld [vmem:[#allocation2] sm:$0xff]  ;;  %v22_v1 = vld [vmem:[#allocation2 + $0x8] sm:$0xff]  ;;  %v188_v58 = vmov 1966171168   ;;  %v96_v60 = vlaneseq }
  0x13   :  { %v23_v2 = vrot.slane %v21_v0, 4  ;;  %v29_v3 = vrot.slane %v22_v1, 4  ;;  %v94_v59 = vunpack.c.l.s4 %v188_v58  ;;  %s189_s0 = smov [#allocation5]  }
  0x14   :  { %s119_s18 = sshll.u32 %s189_s0, 4  ;;  %vm110_vm0 = vcmp.lt.s32.totalorder %v96_v60, 256  ;;  %s120_s18 = int_to_ptr.vmem [resolvable:$true] %s119_s18 }
  0x15   :  { %v24_v4 = vadd.f32 %v23_v2, %v21_v0  ;;  %v30_v5 = vadd.f32 %v29_v3, %v22_v1  ;;  %v95_v3 = vunpack.c.0.s8 %v94_v59  ;;  %s161_s19 = scalar_lea.vmem %s120_s18, 32  ;;  %p166_p9 = scmp.lt.s32.totalorder %s120_s18, %s120_s18 }
  0x16   :  { %p162_p8 = scmp.ne.s32.totalorder %s120_s18, %s161_s19  ;;  %p167_p10 = scmp.lt.s32.totalorder %s161_s19, %s161_s19 }
  0x17   :  { %v25_v6 = vrot.slane %v24_v4, 2  ;;  %v31_v7 = vrot.slane %v30_v5, 2 }
  0x18   :  { %p168_p11 = por %p167_p10, %p166_p9 }
  0x19   :  { %v26_v8 = vadd.f32 %v25_v6, %v24_v4  ;;  %v32_v9 = vadd.f32 %v31_v7, %v30_v5  ;;  %v97_v4 = vshrl.u32 %v96_v60, 7 }
  0x1a   :  { %p169_p12 = pnand %p168_p11, %p162_p8 }
  0x1b   :  { %v27_v10 = vrot.slane %v26_v8, 1  ;;  %v33_v11 = vrot.slane %v32_v9, 1 }
  0x1d   :  { %v28_v12 = vadd.f32 %v27_v10, %v26_v8  ;;  %v34_v13 = vadd.f32 %v33_v11, %v32_v9  ;;  %v98_v9 = vsub.s32 %v95_v3, %v97_v4 }
  0x1f   :  { %v36_v14 = vmul.f32 0.125, %v28_v12  ;;  %v37_v15 = vmul.f32 0.125, %v34_v13 }
  0x21   :  { %v38_v16 = vsub.f32 %v21_v0, %v36_v14  ;;  %v39_v17 = vsub.f32 %v22_v1, %v37_v15 }
  0x23   :  { %v40_v18 = vmul.f32 %v38_v16, %v38_v16  ;;  %v41_v19 = vmul.f32 %v39_v17, %v39_v17 }
  0x25   :  { %v42_v20 = vrot.slane %v40_v18, 4  ;;  %v48_v21 = vrot.slane %v41_v19, 4 }
  0x27   :  { %v43_v22 = vadd.f32 %v42_v20, %v40_v18  ;;  %v49_v23 = vadd.f32 %v48_v21, %v41_v19 }
  0x29   :  { %v44_v24 = vrot.slane %v43_v22, 2  ;;  %v50_v25 = vrot.slane %v49_v23, 2 }
  0x2b   :  { %v45_v26 = vadd.f32 %v44_v24, %v43_v22  ;;  %v51_v27 = vadd.f32 %v50_v25, %v49_v23 }
  0x2d   :  { %v46_v28 = vrot.slane %v45_v26, 1  ;;  %v52_v29 = vrot.slane %v51_v27, 1 }
  0x2f   :  { %v47_v30 = vadd.f32 %v46_v28, %v45_v26  ;;  %v53_v31 = vadd.f32 %v52_v29, %v51_v27 }
  0x31   :  { %v54_v32 = vmul.f32 0.14285715, %v47_v30  ;;  %v55_v33 = vmul.f32 0.14285715, %v53_v31 }
  0x33   :  { %v56_v34 = vadd.f32 0.001, %v54_v32  ;;  %v57_v35 = vadd.f32 0.001, %v55_v33 }
  0x35   :  { %v58_v36 = vmul.f32 4.0, %v56_v34  ;;  %v59_v37 = vmul.f32 4.0, %v57_v35 }
  0x37   :  { %131 = vrcp.f32 %v58_v36 }
  0x38   :  { %133 = vrcp.f32 %v59_v37 }
  0x41   :  { %v132_v38 = vpop.eup %131 }
  0x42   :  { %v134_v39 = vpop.eup %133  ;;  %v64_v40 = vmul.f32 %v132_v38, %v40_v18 }
  0x43   :  { %v65_v41 = vmul.f32 %v134_v39, %v41_v19 }
  0x44   :  { %v66_v42 = vadd.f32 0.5, %v64_v40 }
  0x45   :  { %v67_v43 = vadd.f32 0.5, %v65_v41 }
  0x46   :  { %v68_v44 = vmul.f32 0.5, %v66_v42 }
  0x47   :  { %v69_v45 = vmul.f32 0.5, %v67_v43 }
  0x48   :  { %135 = vtanh.f32 %v68_v44 }
  0x49   :  { %137 = vtanh.f32 %v69_v45 }
  0x52   :  { %v136_v46 = vpop.eup %135 }
  0x53   :  { %v138_v47 = vpop.eup %137  ;;  %v72_v48 = vmul.f32 0.5, %v136_v46 }
  0x54   :  { %v73_v49 = vmul.f32 0.5, %v138_v47 }
  0x55   :  { %v74_v50 = vadd.f32 0.5, %v72_v48 }
  0x56   :  { %v75_v51 = vadd.f32 0.5, %v73_v49 }
  0x57   :  { %v76_v52 = vmul.f32 %v74_v50, %v21_v0 }
  0x58   :  { %v77_v53 = vmul.f32 %v75_v51, %v22_v1 }
  0x59   :  { %v78_v54 = vrot.slane %v76_v52, 4 }
  0x5a   :  { %v84_v55 = vrot.slane %v77_v53, 4 }
  0x5b   :  { %v79_v56 = vadd.f32 %v78_v54, %v76_v52 }
  0x5c   :  { %v85_v57 = vadd.f32 %v84_v55, %v77_v53 }
  0x5d   :  { %v80_v61 = vrot.slane %v79_v56, 2 }
  0x5e   :  { %v86_v62 = vrot.slane %v85_v57, 2 }
  0x5f   :  { %v81_v63 = vadd.f32 %v80_v61, %v79_v56 }
  0x60   :  { %v87_v2 = vadd.f32 %v86_v62, %v85_v57 }
  0x61   :  { %v82_v5 = vrot.slane %v81_v63, 1 }
  0x62   :  { %v88_v6 = vrot.slane %v87_v2, 1 }
  0x63   :  { %v83_v7 = vadd.f32 %v82_v5, %v81_v63 }
  0x64   :  { %v89_v8 = vadd.f32 %v88_v6, %v87_v2 }
  0x66   :  { %v92_v0 = vcombine.low %v83_v7, %v89_v8 }
  0x68   :  { %v99_v1 = vrot.slane %v92_v0, %v98_v9 }
  0x6a   :  { %v106_v10 = vrot.slane %v99_v1, %v98_v9 }
  0x6c   :  { %112 = vst.msk [vmem:[#allocation5] sm:$0x3] %vm110_vm0, %v106_v10 }
  0x6d   :  { %172 = shalt.err (!%p169_p12)
}
  0x6e   :  { %s173_s22 = scalar_lea.hbm %s225_s1, 32 }
  0x6f   :  { %p174_p13 = scmp.ne.s32.totalorder %s225_s1, %s173_s22  ;;  %p177_p0 = scmp.lt.u32.totalorder %s173_s22, %s225_s1 }
  0x71   :  { %p179_p1 = pnand %p177_p0, %p174_p13 }
  0x73   :  { %182 = shalt.err (!%p179_p1)
}
  0x74   :  { %122 = dma.vmem_to_hbm [thread:$0]  %s120_s18, 32, %s225_s1, [#allocation4]  }
  0x75   :  { %185 = dma.done.wait [#allocation4], 32  }
  0x76   :  { %186 = vsyncadd [#allocation4], 4294967264 }
  0x77   :  { %126 = vsyncpa [#allocation3], 1 }
  0x78   :  { %127 = vsyncpa [#allocation4], 1 }

</bundles_post_ra>
